<compile_context>
chip_gen: v6e
topology: v6e:2x2x1
jax: 0.10.0
libtpu: 0.0.40
codegen_flags: <defaults>
</compile_context>

<pallas_src>
import numpy as np
import jax
import jax.numpy as jnp
from jax.experimental import pallas as pl
from jax.experimental.pallas import tpu as pltpu


# ----------------------------------------------------------------------------
# Pallas kernels
# ----------------------------------------------------------------------------
def _encoder_kernel(x_ref, w_ref, b_ref, o_ref):
    h = jnp.dot(x_ref[...], w_ref[...], preferred_element_type=jnp.float32)
    o_ref[...] = jnp.tanh(h + b_ref[...])


def encoder_linear(x, w, b):
    """tanh(x @ w + b) over the concatenated (text + concept) rows."""
    n, d = x.shape
    do = w.shape[1]
    full = lambda shape: pl.BlockSpec(shape, lambda i, _s=shape: (0,) * len(_s))
    return pl.pallas_call(
        _encoder_kernel,
        grid=(1,),
        in_specs=[full((n, d)), full((d, do)), full((1, do))],
        out_specs=full((n, do)),
        out_shape=jax.ShapeDtypeStruct((n, do), jnp.float32),
    )(x, w, b.reshape(1, do))


def _facet_kernel(reps_ref, w1_ref, b1_ref, w2_ref, b2_ref, invt_ref,
                  addm_ref, posm_ref, logits_ref, loss_ref):
    """Fused per-facet work: contrastive loss + classification MLP head."""
    nb = logits_ref.shape[1]                   # padded per-facet text rows
    reps = reps_ref[0]                         # (N, D): [text rows | 3 ideo reps]

    # ---- concept-guided contrastive loss: cos-sim / t2, masked softmax -----
    dots = jax.lax.dot_general(reps, reps, (((1,), (1,)), ((), ())),
                               preferred_element_type=jnp.float32)      # (N,N)
    norms = jnp.sqrt(jnp.sum(reps * reps, axis=-1, keepdims=True))      # (N,1)
    denom = jax.lax.dot_general(norms, norms, (((1,), (1,)), ((), ())),
                                preferred_element_type=jnp.float32)     # (N,N)
    denom = jnp.maximum(denom, 1e-8)                                    # torch eps
    sim = dots * pl.reciprocal(denom, approx=True) * invt_ref[0]        # /t2[i]
    sim = sim + addm_ref[0]                    # -1e30 on diag + padded columns
    sim = sim - jnp.max(sim, axis=-1, keepdims=True)
    e = jnp.exp(sim)
    probs = e * pl.reciprocal(jnp.sum(e, axis=-1, keepdims=True), approx=True)

    pos = posm_ref[0]                                                   # (N,N)
    row_sum = jnp.sum(probs * pos, axis=-1, keepdims=True)              # (N,1)
    has_pos = jnp.sum(pos, axis=-1, keepdims=True) > 0.0                # (N,1)
    logterm = jnp.where(has_pos,
                        jnp.log(jnp.where(has_pos, row_sum, 1.0)), 0.0)
    total = jnp.sum(logterm, keepdims=True)                             # (1,1)
    nvalid = jnp.sum(has_pos.astype(jnp.float32), keepdims=True)        # (1,1)
    loss = jnp.where(nvalid > 0.0, -total / jnp.maximum(nvalid, 1.0),
                     jnp.zeros_like(total))
    loss_ref[...] = loss.reshape(1, 1, 1)

    # ---- classification MLP head on this facet's (padded) text rows --------
    # TODO(synk): dropout inside the reference MLP omitted (deterministic run).
    x = reps[:nb]
    h = jnp.tanh(jnp.dot(x, w1_ref[0], preferred_element_type=jnp.float32)
                 + b1_ref[0])
    logits = jnp.dot(h, w2_ref[0], preferred_element_type=jnp.float32) + b2_ref[0]
    logits_ref[...] = logits[None]


def facet_batched(reps_g, w1, b1, w2, b2, inv_t, add_mask, pos_mask):
    """One grid=(12,) pallas_call over the stacked per-facet weights."""
    f, n, d = reps_g.shape
    c = w2.shape[-1]
    bsz = n - 3
    b1r = b1.reshape(f, 1, d)
    b2r = b2.reshape(f, 1, c)
    invt = inv_t.reshape(f, 1, 1).astype(jnp.float32)

    def blk(shape):
        nd = len(shape)
        return pl.BlockSpec(shape, lambda i, _nd=nd: (i,) + (0,) * (_nd - 1))

    logits, loss = pl.pallas_call(
        _facet_kernel,
        grid=(f,),
        in_specs=[blk((1, n, d)),      # per-facet reps (text rows + ideo reps)
                  blk((1, d, d)),      # mlp w1
                  blk((1, 1, d)),      # mlp b1
                  blk((1, d, c)),      # mlp w2
                  blk((1, 1, c)),      # mlp b2
                  blk((1, 1, 1)),      # 1 / t2[i]
                  blk((1, n, n)),      # additive softmax mask (diag + padding)
                  blk((1, n, n))],     # positive-pair mask
        out_specs=(blk((1, bsz, c)), blk((1, 1, 1))),
        out_shape=(jax.ShapeDtypeStruct((f, bsz, c), jnp.float32),
                   jax.ShapeDtypeStruct((f, 1, 1), jnp.float32)),
        compiler_params=pltpu.CompilerParams(
            dimension_semantics=("parallel",)),   # v7x: facets across 2 TCs
    )(reps_g, w1, b1r, w2, b2r, invt, add_mask, pos_mask)
    return logits, loss


# ----------------------------------------------------------------------------
# Jitted device-side forward (fixed shapes, no host control flow)
# ----------------------------------------------------------------------------
@jax.jit
def _forward_core(params, ids_text, mask_text, facet_idx, label,
                  ids_concept, mask_concept, M, inv_t):
    emb, w_enc, b_enc = params["emb"], params["w_enc"], params["b_enc"]
    dim = w_enc.shape[0]
    bsz = ids_text.shape[0]

    # TODO(synk): pretrained AutoModel text_encoder has no Pallas equivalent;
    # replaced by masked-mean-pooled token embeddings + tanh(linear) stand-in
    # producing the same (rows, dim) "CLS" representation shape.
    def pool(ids, mask):
        tok = emb[ids]
        m = mask.astype(jnp.float32)[..., None]
        return jnp.sum(tok * m, axis=1) / jnp.maximum(jnp.sum(m, axis=1), 1.0)

    pooled = jnp.concatenate([pool(ids_text, mask_text),
                              pool(ids_concept, mask_concept)], axis=0)
    reps_all = encoder_linear(pooled, w_enc, b_enc)        # Pallas call #1
    text_rep = reps_all[:bsz]
    concept_rep = reps_all[bsz:]

    # root_domain_rep_from_facet as one tiny (6,12)@(12,dim) product (jnp).
    root_domain = M @ concept_rep[:12]
    concept_all = jnp.concatenate([root_domain, concept_rep], axis=0)
    # TODO(synk): HieTree (arg.concept_tree=True path) not implemented;
    # this models the arg.concept_tree=False branch.
    ideo_rep = concept_all[-36:]                           # (36, dim)

    # 12 bias-free ideo_rep linears as one batched einsum (tiny -> plain jnp).
    ideo_t = jnp.einsum("fkd,fde->fke", ideo_rep.reshape(12, 3, dim),
                        params["ideo_w"])                  # (12, 3, dim)

    # ---- on-device facet routing (stable within-facet batch order) ---------
    fi = facet_idx.astype(jnp.int32)
    lab = label.astype(jnp.int32)
    counts = jnp.sum((fi[None, :] == jnp.arange(12, dtype=jnp.int32)[:, None])
                     .astype(jnp.int32), axis=1)           # (12,)
    order = jnp.argsort(fi, stable=True)                   # (bsz,)
    offsets = jnp.concatenate(
        [jnp.zeros((1,), jnp.int32), jnp.cumsum(counts)[:-1].astype(jnp.int32)])
    slot = jnp.arange(bsz, dtype=jnp.int32)
    gidx = order[jnp.clip(offsets[:, None] + slot[None, :], 0, bsz - 1)]  # (12,bsz)
    row_valid = slot[None, :] < counts[:, None]                           # (12,bsz)

    text_g = text_rep[gidx]                                # (12, bsz, dim)
    reps_g = jnp.concatenate([text_g, ideo_t], axis=1)     # (12, bsz+3, dim)

    n = bsz + 3
    lab_g = jnp.where(row_valid, lab[gidx], -1)
    lab_full = jnp.concatenate(
        [lab_g, jnp.broadcast_to(jnp.arange(3, dtype=jnp.int32), (12, 3))],
        axis=1)                                            # (12, n)
    valid_full = jnp.concatenate(
        [row_valid, jnp.ones((12, 3), dtype=bool)], axis=1)  # (12, n)

    eye = jnp.eye(n, dtype=bool)[None]
    same = lab_full[:, :, None] == lab_full[:, None, :]
    pos_mask = (same & valid_full[:, :, None] & valid_full[:, None, :]
                & ~eye).astype(jnp.float32)                # (12, n, n)
    add_mask = jnp.where(eye | ~valid_full[:, None, :],
                         jnp.float32(-1e30), jnp.float32(0.0))  # (12, n, n)

    logits_pad, cl = facet_batched(                        # Pallas call #2
        reps_g, params["mlp_w1"], params["mlp_b1"],
        params["mlp_w2"], params["mlp_b2"], inv_t, add_mask, pos_mask)
    return logits_pad, cl.reshape(12), counts


# ----------------------------------------------------------------------------
# User-facing wrapper (rebuilds the reference's Python list outputs)
# ----------------------------------------------------------------------------
def ideology_net_forward(params, ids_text, mask_text, facet_idx, label,
                         ids_concept, mask_concept, tree_counts, t2,
                         training=True):
    # Segment-averaging matrix M (6,12): row 0 -> root mean, rows 1..5 ->
    # per-domain means over the 12 facet reps.
    A = np.zeros((5, 12), np.float32)
    s = 0
    for i, cnt in enumerate(tree_counts):
        A[i, s:s + cnt] = 1.0 / cnt
        s += cnt
    M = np.concatenate([np.full((1, 5), 0.2, np.float32) @ A, A], axis=0)
    inv_t = np.asarray([1.0 / float(t) for t in t2], np.float32)

    logits_pad, cl, counts = _forward_core(
        params, ids_text, mask_text, facet_idx, label,
        ids_concept, mask_concept, jnp.asarray(M), jnp.asarray(inv_t))

    # Single device->host sync: the (12,) facet counts, needed only to build
    # the reference's variable-length list outputs.
    counts_host = np.asarray(jax.device_get(counts))
    logits_list, cl_loss_list = [], []
    for i in range(12):
        ni = int(counts_host[i])
        if ni == 0:
            cl_loss_list.append(jnp.zeros((1,), jnp.float32))
            continue
        if training:
            cl_loss_list.append(cl[i].reshape(1))
        logits_list.append(logits_pad[i, :ni])
    return logits_list, cl_loss_list


def init_params(key, dim, cls_num, vocab):
    ks = jax.random.split(key, 5)
    return {
        "emb":    jax.random.normal(ks[0], (vocab, dim), jnp.float32) * 0.02,
        "w_enc":  jax.random.normal(ks[1], (dim, dim), jnp.float32) * 0.05,
        "b_enc":  jnp.zeros((dim,), jnp.float32),
        "ideo_w": jax.random.normal(ks[2], (12, dim, dim), jnp.float32) * 0.05,
        "mlp_w1": jax.random.normal(ks[3], (12, dim, dim), jnp.float32) * 0.05,
        "mlp_b1": jnp.zeros((12, dim), jnp.float32),
        "mlp_w2": jax.random.normal(ks[4], (12, dim, cls_num), jnp.float32) * 0.05,
        "mlp_b2": jnp.zeros((12, cls_num), jnp.float32),
    }


# ----------------------------------------------------------------------------
if __name__ == "__main__":
    key = jax.random.PRNGKey(0)
    dim, cls_num, vocab, seq, batch = 32, 3, 50, 8, 6
    n_concepts = 48                      # 12 facets + 36 ideology concepts

    kp, k1, k2, k3, k4 = jax.random.split(key, 5)
    params = init_params(kp, dim, cls_num, vocab)

    ids_text = jax.random.randint(k1, (batch, seq), 0, vocab)
    mask_text = jnp.ones((batch, seq), jnp.int32)
    ids_concept = jax.random.randint(k2, (n_concepts, seq), 0, vocab)
    mask_concept = jnp.ones((n_concepts, seq), jnp.int32)
    facet_idx = jax.random.randint(k3, (batch,), 0, 12)
    label = jax.random.randint(k4, (batch,), 0, cls_num)

    tree_counts = [3, 3, 2, 2, 2]        # tree_structure[2]: 5 domains, 12 facets
    t2 = [0.1] * 12                      # arg.t2 temperatures

    logits_list, cl_loss_list = ideology_net_forward(
        params, ids_text, mask_text, facet_idx, label,
        ids_concept, mask_concept, tree_counts, t2, training=True)

    jax.block_until_ready((logits_list, cl_loss_list))
    print("KERNEL_OK")
</pallas_src>

<mosaic_0001>
module attributes {stable_mosaic.version = 11 : i64} {
  func.func @_encoder_kernel(%arg0: i32, %arg1: memref<54x32xf32, #tpu.memory_space<vmem>>, %arg2: memref<32x32xf32, #tpu.memory_space<vmem>>, %arg3: memref<1x32xf32, #tpu.memory_space<vmem>>, %arg4: memref<54x32xf32, #tpu.memory_space<vmem>>) attributes {dimension_semantics = [#tpu.dimension_semantics<arbitrary>], iteration_bounds = array<i64: 1>, scalar_prefetch = 0 : i64, scratch_operands = 0 : i64, tpu.core_type = #tpu.core_type<tc>, window_params = [{pipeline_mode = #tpu.pipeline_mode<synchronous>, transform_indices = @transform_0, window_bounds = array<i64: 54, 32>}, {pipeline_mode = #tpu.pipeline_mode<synchronous>, transform_indices = @transform_1, window_bounds = array<i64: 32, 32>}, {pipeline_mode = #tpu.pipeline_mode<synchronous>, transform_indices = @transform_2, window_bounds = array<i64: 1, 32>}, {pipeline_mode = #tpu.pipeline_mode<synchronous>, transform_indices = @transform_3, window_bounds = array<i64: 54, 32>}]} {
    %c0 = arith.constant 0 : index
    %c0_0 = arith.constant 0 : index
    %0 = vector.load %arg1[%c0, %c0_0] : memref<54x32xf32, #tpu.memory_space<vmem>>, vector<54x32xf32>
    %c0_1 = arith.constant 0 : index
    %c0_2 = arith.constant 0 : index
    %1 = vector.load %arg2[%c0_1, %c0_2] : memref<32x32xf32, #tpu.memory_space<vmem>>, vector<32x32xf32>
    %cst = arith.constant dense<0.000000e+00> : vector<54x32xf32>
    %2 = tpu.matmul %0, %1, %cst {dimension_numbers = #tpu.dot_dimension_numbers<[1], [0], [0], [1], [0, 0, 1, 1], [], []>} : vector<54x32xf32>, vector<32x32xf32>, vector<54x32xf32> -> vector<54x32xf32>
    %c0_3 = arith.constant 0 : index
    %c0_4 = arith.constant 0 : index
    %3 = vector.load %arg3[%c0_3, %c0_4] : memref<1x32xf32, #tpu.memory_space<vmem>>, vector<1x32xf32>
    %4 = vector.broadcast %3 : vector<1x32xf32> to vector<54x32xf32>
    %5 = arith.addf %2, %4 : vector<54x32xf32>
    %6 = math.tanh %5 : vector<54x32xf32>
    %c0_5 = arith.constant 0 : index
    %c0_6 = arith.constant 0 : index
    %7 = vector.load %arg4[%c0_5, %c0_6] : memref<54x32xf32, #tpu.memory_space<vmem>>, vector<54x32xf32>
    tpu.vector_store %arg4[%c0_5, %c0_6], %6 {strides = array<i32>} : memref<54x32xf32, #tpu.memory_space<vmem>>, vector<54x32xf32>,
    return
  }
  func.func @transform_0(%arg0: i32) -> (i32, i32) {
    %c0_i32 = arith.constant 0 : i32
    %c0_i32_0 = arith.constant 0 : i32
    %c0_i32_1 = arith.constant 0 : i32
    return %c0_i32, %c0_i32_0 : i32, i32
  }
  func.func @transform_1(%arg0: i32) -> (i32, i32) {
    %c0_i32 = arith.constant 0 : i32
    %c0_i32_0 = arith.constant 0 : i32
    %c0_i32_1 = arith.constant 0 : i32
    return %c0_i32, %c0_i32_0 : i32, i32
  }
  func.func @transform_2(%arg0: i32) -> (i32, i32) {
    %c0_i32 = arith.constant 0 : i32
    %c0_i32_0 = arith.constant 0 : i32
    %c0_i32_1 = arith.constant 0 : i32
    return %c0_i32, %c0_i32_0 : i32, i32
  }
  func.func @transform_3(%arg0: i32) -> (i32, i32) {
    %c0_i32 = arith.constant 0 : i32
    %c0_i32_0 = arith.constant 0 : i32
    %c0_i32_1 = arith.constant 0 : i32
    return %c0_i32, %c0_i32_0 : i32, i32
  }
}

module attributes {stable_mosaic.version = 11 : i64} {
  func.func @_facet_kernel(%arg0: i32, %arg1: memref<1x9x32xf32, #tpu.memory_space<vmem>>, %arg2: memref<1x32x32xf32, #tpu.memory_space<vmem>>, %arg3: memref<1x1x32xf32, #tpu.memory_space<vmem>>, %arg4: memref<1x32x3xf32, #tpu.memory_space<vmem>>, %arg5: memref<1x1x3xf32, #tpu.memory_space<vmem>>, %arg6: memref<1x1x1xf32, #tpu.memory_space<vmem>>, %arg7: memref<1x9x9xf32, #tpu.memory_space<vmem>>, %arg8: memref<1x9x9xf32, #tpu.memory_space<vmem>>, %arg9: memref<1x6x3xf32, #tpu.memory_space<vmem>>, %arg10: memref<1x1x1xf32, #tpu.memory_space<vmem>>) attributes {dimension_semantics = [#tpu.dimension_semantics<parallel>], iteration_bounds = array<i64: 12>, scalar_prefetch = 0 : i64, scratch_operands = 0 : i64, tpu.core_type = #tpu.core_type<tc>, window_params = [{transform_indices = @transform_0, window_bounds = array<i64: 1, 9, 32>}, {transform_indices = @transform_1, window_bounds = array<i64: 1, 32, 32>}, {transform_indices = @transform_2, window_bounds = array<i64: 1, 1, 32>}, {transform_indices = @transform_3, window_bounds = array<i64: 1, 32, 3>}, {transform_indices = @transform_4, window_bounds = array<i64: 1, 1, 3>}, {transform_indices = @transform_5, window_bounds = array<i64: 1, 1, 1>}, {transform_indices = @transform_6, window_bounds = array<i64: 1, 9, 9>}, {transform_indices = @transform_7, window_bounds = array<i64: 1, 9, 9>}, {transform_indices = @transform_8, window_bounds = array<i64: 1, 6, 3>}, {transform_indices = @transform_9, window_bounds = array<i64: 1, 1, 1>}]} {
    %c0 = arith.constant 0 : index
    %c0_0 = arith.constant 0 : index
    %c0_1 = arith.constant 0 : index
    %0 = vector.load %arg1[%c0, %c0_0, %c0_1] : memref<1x9x32xf32, #tpu.memory_space<vmem>>, vector<1x9x32xf32>
    %1 = vector.shape_cast %0 : vector<1x9x32xf32> to vector<9x32xf32>
    %cst = arith.constant dense<0.000000e+00> : vector<9x9xf32>
    %2 = tpu.matmul %1, %1, %cst {dimension_numbers = #tpu.dot_dimension_numbers<[1], [1], [0], [0], [0, 0, 1, 0], [], []>} : vector<9x32xf32>, vector<9x32xf32>, vector<9x9xf32> -> vector<9x9xf32>
    %3 = arith.mulf %1, %1 : vector<9x32xf32>
    %cst_2 = arith.constant dense<0.000000e+00> : vector<9xf32>
    %4 = vector.multi_reduction <add>, %3, %cst_2 [1] : vector<9x32xf32> to vector<9xf32>
    %5 = vector.shape_cast %4 : vector<9xf32> to vector<9x1xf32>
    %6 = math.sqrt %5 : vector<9x1xf32>
    %cst_3 = arith.constant dense<0.000000e+00> : vector<9x9xf32>
    %7 = tpu.matmul %6, %6, %cst_3 {dimension_numbers = #tpu.dot_dimension_numbers<[1], [1], [0], [0], [0, 0, 1, 0], [], []>} : vector<9x1xf32>, vector<9x1xf32>, vector<9x9xf32> -> vector<9x9xf32>
    %cst_4 = arith.constant 9.99999993E-9 : f32
    %8 = vector.broadcast %cst_4 : f32 to vector<9x9xf32>
    %9 = arith.maximumf %7, %8 : vector<9x9xf32>
    %10 = tpu.reciprocal %9 {approx = true} : vector<9x9xf32> -> vector<9x9xf32>
    %11 = arith.mulf %2, %10 : vector<9x9xf32>
    %c0_5 = arith.constant 0 : index
    %c0_6 = arith.constant 0 : index
    %c0_7 = arith.constant 0 : index
    %12 = vector.load %arg6[%c0_5, %c0_6, %c0_7] : memref<1x1x1xf32, #tpu.memory_space<vmem>>, vector<1x1x1xf32>
    %13 = vector.shape_cast %12 : vector<1x1x1xf32> to vector<1x1xf32>
    %14 = vector.broadcast %13 : vector<1x1xf32> to vector<9x9xf32>
    %15 = arith.mulf %11, %14 : vector<9x9xf32>
    %c0_8 = arith.constant 0 : index
    %c0_9 = arith.constant 0 : index
    %c0_10 = arith.constant 0 : index
    %16 = vector.load %arg7[%c0_8, %c0_9, %c0_10] : memref<1x9x9xf32, #tpu.memory_space<vmem>>, vector<1x9x9xf32>
    %17 = vector.shape_cast %16 : vector<1x9x9xf32> to vector<9x9xf32>
    %18 = arith.addf %15, %17 : vector<9x9xf32>
    %cst_11 = arith.constant dense<0xFF800000> : vector<9xf32>
    %19 = vector.multi_reduction <maximumf>, %18, %cst_11 [1] : vector<9x9xf32> to vector<9xf32>
    %20 = vector.shape_cast %19 : vector<9xf32> to vector<9x1xf32>
    %21 = vector.broadcast %20 : vector<9x1xf32> to vector<9x9xf32>
    %22 = arith.subf %18, %21 : vector<9x9xf32>
    %23 = math.exp %22 : vector<9x9xf32>
    %cst_12 = arith.constant dense<0.000000e+00> : vector<9xf32>
    %24 = vector.multi_reduction <add>, %23, %cst_12 [1] : vector<9x9xf32> to vector<9xf32>
    %25 = vector.shape_cast %24 : vector<9xf32> to vector<9x1xf32>
    %26 = tpu.reciprocal %25 {approx = true} : vector<9x1xf32> -> vector<9x1xf32>
    %27 = vector.broadcast %26 : vector<9x1xf32> to vector<9x9xf32>
    %28 = arith.mulf %23, %27 : vector<9x9xf32>
    %c0_13 = arith.constant 0 : index
    %c0_14 = arith.constant 0 : index
    %c0_15 = arith.constant 0 : index
    %29 = vector.load %arg8[%c0_13, %c0_14, %c0_15] : memref<1x9x9xf32, #tpu.memory_space<vmem>>, vector<1x9x9xf32>
    %30 = vector.shape_cast %29 : vector<1x9x9xf32> to vector<9x9xf32>
    %31 = arith.mulf %28, %30 : vector<9x9xf32>
    %cst_16 = arith.constant dense<0.000000e+00> : vector<9xf32>
    %32 = vector.multi_reduction <add>, %31, %cst_16 [1] : vector<9x9xf32> to vector<9xf32>
    %33 = vector.shape_cast %32 : vector<9xf32> to vector<9x1xf32>
    %cst_17 = arith.constant dense<0.000000e+00> : vector<9xf32>
    %34 = vector.multi_reduction <add>, %30, %cst_17 [1] : vector<9x9xf32> to vector<9xf32>
    %35 = vector.shape_cast %34 : vector<9xf32> to vector<9x1xf32>
    %cst_18 = arith.constant 0.000000e+00 : f32
    %36 = vector.broadcast %cst_18 : f32 to vector<9x1xf32>
    %37 = arith.cmpf ogt, %35, %36 : vector<9x1xf32>
    %cst_19 = arith.constant 1.000000e+00 : f32
    %38 = vector.broadcast %cst_19 : f32 to vector<9x1xf32>
    %39 = arith.select %37, %33, %38 : vector<9x1xi1>, vector<9x1xf32>
    %40 = math.log %39 : vector<9x1xf32>
    %cst_20 = arith.constant 0.000000e+00 : f32
    %41 = vector.broadcast %cst_20 : f32 to vector<9x1xf32>
    %42 = arith.select %37, %40, %41 : vector<9x1xi1>, vector<9x1xf32>
    %43 = vector.shape_cast %42 : vector<9x1xf32> to vector<1x9x1xf32>
    %cst_21 = arith.constant dense<0.000000e+00> : vector<1xf32>
    %44 = vector.multi_reduction <add>, %43, %cst_21 [1, 2] : vector<1x9x1xf32> to vector<1xf32>
    %45 = vector.shape_cast %44 : vector<1xf32> to vector<1x1x1xf32>
    %46 = vector.extract %45[0, 0, 0] : f32 from vector<1x1x1xf32>
    %47 = vector.broadcast %46 : f32 to vector<1x1xf32>
    %48 = arith.extui %37 : vector<9x1xi1> to vector<9x1xi32>
    %49 = arith.sitofp %48 : vector<9x1xi32> to vector<9x1xf32>
    %50 = vector.shape_cast %49 : vector<9x1xf32> to vector<1x9x1xf32>
    %cst_22 = arith.constant dense<0.000000e+00> : vector<1xf32>
    %51 = vector.multi_reduction <add>, %50, %cst_22 [1, 2] : vector<1x9x1xf32> to vector<1xf32>
    %52 = vector.shape_cast %51 : vector<1xf32> to vector<1x1x1xf32>
    %53 = vector.extract %52[0, 0, 0] : f32 from vector<1x1x1xf32>
    %54 = vector.broadcast %53 : f32 to vector<1x1xf32>
    %cst_23 = arith.constant 0.000000e+00 : f32
    %55 = vector.broadcast %cst_23 : f32 to vector<1x1xf32>
    %56 = arith.cmpf ogt, %54, %55 : vector<1x1xf32>
    %cst_24 = arith.constant 0.000000e+00 : f32
    %57 = vector.broadcast %cst_24 : f32 to vector<1x1xf32>
    %58 = arith.subf %57, %47 : vector<1x1xf32>
    %cst_25 = arith.constant 1.000000e+00 : f32
    %59 = vector.broadcast %cst_25 : f32 to vector<1x1xf32>
    %60 = arith.maximumf %54, %59 : vector<1x1xf32>
    %61 = arith.divf %58, %60 : vector<1x1xf32>
    %cst_26 = arith.constant 0.000000e+00 : f32
    %62 = vector.broadcast %cst_26 : f32 to vector<1x1xf32>
    %63 = arith.select %56, %61, %62 : vector<1x1xi1>, vector<1x1xf32>
    %64 = vector.shape_cast %63 : vector<1x1xf32> to vector<1x1x1xf32>
    %c0_27 = arith.constant 0 : index
    %c0_28 = arith.constant 0 : index
    %c0_29 = arith.constant 0 : index
    %65 = vector.load %arg10[%c0_27, %c0_28, %c0_29] : memref<1x1x1xf32, #tpu.memory_space<vmem>>, vector<1x1x1xf32>
    tpu.vector_store %arg10[%c0_27, %c0_28, %c0_29], %64 {strides = array<i32>} : memref<1x1x1xf32, #tpu.memory_space<vmem>>, vector<1x1x1xf32>,
    %66 = vector.extract_strided_slice %1 {offsets = [0, 0], sizes = [6, 32], strides = [1, 1]} : vector<9x32xf32> to vector<6x32xf32>
    %c0_30 = arith.constant 0 : index
    %c0_31 = arith.constant 0 : index
    %c0_32 = arith.constant 0 : index
    %67 = vector.load %arg2[%c0_30, %c0_31, %c0_32] : memref<1x32x32xf32, #tpu.memory_space<vmem>>, vector<1x32x32xf32>
    %68 = vector.shape_cast %67 : vector<1x32x32xf32> to vector<32x32xf32>
    %cst_33 = arith.constant dense<0.000000e+00> : vector<6x32xf32>
    %69 = tpu.matmul %66, %68, %cst_33 {dimension_numbers = #tpu.dot_dimension_numbers<[1], [0], [0], [1], [0, 0, 1, 1], [], []>} : vector<6x32xf32>, vector<32x32xf32>, vector<6x32xf32> -> vector<6x32xf32>
    %c0_34 = arith.constant 0 : index
    %c0_35 = arith.constant 0 : index
    %c0_36 = arith.constant 0 : index
    %70 = vector.load %arg3[%c0_34, %c0_35, %c0_36] : memref<1x1x32xf32, #tpu.memory_space<vmem>>, vector<1x1x32xf32>
    %71 = vector.shape_cast %70 : vector<1x1x32xf32> to vector<1x32xf32>
    %72 = vector.broadcast %71 : vector<1x32xf32> to vector<6x32xf32>
    %73 = arith.addf %69, %72 : vector<6x32xf32>
    %74 = math.tanh %73 : vector<6x32xf32>
    %c0_37 = arith.constant 0 : index
    %c0_38 = arith.constant 0 : index
    %c0_39 = arith.constant 0 : index
    %75 = vector.load %arg4[%c0_37, %c0_38, %c0_39] : memref<1x32x3xf32, #tpu.memory_space<vmem>>, vector<1x32x3xf32>
    %76 = vector.shape_cast %75 : vector<1x32x3xf32> to vector<32x3xf32>
    %cst_40 = arith.constant dense<0.000000e+00> : vector<6x3xf32>
    %77 = tpu.matmul %74, %76, %cst_40 {dimension_numbers = #tpu.dot_dimension_numbers<[1], [0], [0], [1], [0, 0, 1, 1], [], []>} : vector<6x32xf32>, vector<32x3xf32>, vector<6x3xf32> -> vector<6x3xf32>
    %c0_41 = arith.constant 0 : index
    %c0_42 = arith.constant 0 : index
    %c0_43 = arith.constant 0 : index
    %78 = vector.load %arg5[%c0_41, %c0_42, %c0_43] : memref<1x1x3xf32, #tpu.memory_space<vmem>>, vector<1x1x3xf32>
    %79 = vector.shape_cast %78 : vector<1x1x3xf32> to vector<1x3xf32>
    %80 = vector.broadcast %79 : vector<1x3xf32> to vector<6x3xf32>
    %81 = arith.addf %77, %80 : vector<6x3xf32>
    %82 = vector.shape_cast %81 : vector<6x3xf32> to vector<1x6x3xf32>
    %c0_44 = arith.constant 0 : index
    %c0_45 = arith.constant 0 : index
    %c0_46 = arith.constant 0 : index
    %83 = vector.load %arg9[%c0_44, %c0_45, %c0_46] : memref<1x6x3xf32, #tpu.memory_space<vmem>>, vector<1x6x3xf32>
    tpu.vector_store %arg9[%c0_44, %c0_45, %c0_46], %82 {strides = array<i32>} : memref<1x6x3xf32, #tpu.memory_space<vmem>>, vector<1x6x3xf32>,
    return
  }
  func.func @transform_0(%arg0: i32) -> (i32, i32, i32) {
    %c0_i32 = arith.constant 0 : i32
    %c0_i32_0 = arith.constant 0 : i32
    %c0_i32_1 = arith.constant 0 : i32
    return %arg0, %c0_i32, %c0_i32_0 : i32, i32, i32
  }
  func.func @transform_1(%arg0: i32) -> (i32, i32, i32) {
    %c0_i32 = arith.constant 0 : i32
    %c0_i32_0 = arith.constant 0 : i32
    %c0_i32_1 = arith.constant 0 : i32
    return %arg0, %c0_i32, %c0_i32_0 : i32, i32, i32
  }
  func.func @transform_2(%arg0: i32) -> (i32, i32, i32) {
    %c0_i32 = arith.constant 0 : i32
    %c0_i32_0 = arith.constant 0 : i32
    %c0_i32_1 = arith.constant 0 : i32
    return %arg0, %c0_i32, %c0_i32_0 : i32, i32, i32
  }
  func.func @transform_3(%arg0: i32) -> (i32, i32, i32) {
    %c0_i32 = arith.constant 0 : i32
    %c0_i32_0 = arith.constant 0 : i32
    %c0_i32_1 = arith.constant 0 : i32
    return %arg0, %c0_i32, %c0_i32_0 : i32, i32, i32
  }
  func.func @transform_4(%arg0: i32) -> (i32, i32, i32) {
    %c0_i32 = arith.constant 0 : i32
    %c0_i32_0 = arith.constant 0 : i32
    %c0_i32_1 = arith.constant 0 : i32
    return %arg0, %c0_i32, %c0_i32_0 : i32, i32, i32
  }
  func.func @transform_5(%arg0: i32) -> (i32, i32, i32) {
    %c0_i32 = arith.constant 0 : i32
    %c0_i32_0 = arith.constant 0 : i32
    %c0_i32_1 = arith.constant 0 : i32
    return %arg0, %c0_i32, %c0_i32_0 : i32, i32, i32
  }
  func.func @transform_6(%arg0: i32) -> (i32, i32, i32) {
    %c0_i32 = arith.constant 0 : i32
    %c0_i32_0 = arith.constant 0 : i32
    %c0_i32_1 = arith.constant 0 : i32
    return %arg0, %c0_i32, %c0_i32_0 : i32, i32, i32
  }
  func.func @transform_7(%arg0: i32) -> (i32, i32, i32) {
    %c0_i32 = arith.constant 0 : i32
    %c0_i32_0 = arith.constant 0 : i32
    %c0_i32_1 = arith.constant 0 : i32
    return %arg0, %c0_i32, %c0_i32_0 : i32, i32, i32
  }
  func.func @transform_8(%arg0: i32) -> (i32, i32, i32) {
    %c0_i32 = arith.constant 0 : i32
    %c0_i32_0 = arith.constant 0 : i32
    %c0_i32_1 = arith.constant 0 : i32
    return %arg0, %c0_i32, %c0_i32_0 : i32, i32, i32
  }
  func.func @transform_9(%arg0: i32) -> (i32, i32, i32) {
    %c0_i32 = arith.constant 0 : i32
    %c0_i32_0 = arith.constant 0 : i32
    %c0_i32_1 = arith.constant 0 : i32
    return %arg0, %c0_i32, %c0_i32_0 : i32, i32, i32
  }
}

</mosaic_0001>

<bundles_post_ra>
// kernel: _forward_core.2
= control target key start
LH: loop header
LB: loop body
LE: loop exit
PB: predicated region body
PF: predicated region fallthrough
CT: control target
= control target key end

     0   :  { %v245_v0 = vmov 0.0   ;;  %vm32_vm0 = vcmask 261120   ;;  %vm246_vm1 = vmmov 0   ;;  %vm167_vm2 = vcmask 259072   ;;  %s344_s1 = inlined_call_operand.vmem [shape: f32[32,32], index: 1, kind: input, shape index: {}]   ;;  %s345_s0 = inlined_call_operand.vmem [shape: f32[54,32], index: 0, kind: input, shape index: {}]   ;;  %s346_s2 = inlined_call_operand.vmem [shape: f32[1,32], index: 2, kind: input, shape index: {}]   ;;  %s347_s3 = inlined_call_operand.vmem [shape: f32[54,32], index: 3, kind: output, shape index: {}]  }
   0x1   :  { %192 = vmatprep.subr.mxu0 %v245_v0  ;;  %v24_v1 = vld [vmem:[%s344_s1 + $0x18] sm:$0xff]  ;;  %221 = vmatprep.subr.mxu1 %v245_v0  ;;  %v23_v2 = vld [vmem:[%s344_s1 + $0x10] sm:$0xff]  ;;  %v22_v3 = vld [vmem:[%s344_s1 + $0x8] sm:$0xff] }
   0x2   :  { %193 = vmatpush3.msra.mxu0 %v24_v1  ;;  %225 = vmatpush3.msra.mxu1 %v24_v1  ;;  %v21_v4 = vld [vmem:[%s344_s1] sm:$0xff]  ;;  %v15_v7 = vld [vmem:[%s345_s0 + $0x8] sm:$0xff]  ;;  %v16_v9 = vld [vmem:[%s345_s0 + $0x10] sm:$0xff] }
   0x3   :  { %194 = vmatprep.subr.mxu0 %v245_v0  ;;  %222 = vmatprep.subr.mxu1 %v245_v0  ;;  %v14_v5 = vld [vmem:[%s345_s0] sm:$0xff]  ;;  %v19_v8 = vld [vmem:[%s345_s0 + $0x28] sm:$0xff]  ;;  %v20_v10 = vld [vmem:[%s345_s0 + $0x30] sm:$0x3f] }
   0x4   :  { %195 = vmatpush3.msra.mxu0 %v23_v2  ;;  %226 = vmatpush3.msra.mxu1 %v23_v2  ;;  %v18_v6 = vld [vmem:[%s345_s0 + $0x20] sm:$0xff]  ;;  %v17_v11 = vld [vmem:[%s345_s0 + $0x18] sm:$0xff] }
   0x5   :  { %196 = vmatprep.subr.mxu0 %v245_v0  ;;  %223 = vmatprep.subr.mxu1 %v245_v0  ;;  %v173_v12 = vld [vmem:[%s346_s2] ss:$0 sm:$0xff] }
   0x6   :  { %197 = vmatpush3.msra.mxu0 %v22_v3  ;;  %227 = vmatpush3.msra.mxu1 %v22_v3 }
   0x7   :  { %198 = vmatprep.subr.mxu0 %v245_v0  ;;  %200 = vmatprep.mubr.msk.f32.mxu0 %vm246_vm1, %v245_v0 }
   0x8   :  { %199 = vmatpush3.msra.mxu0 %v21_v4  ;;  %224 = vmatprep.subr.mxu1 %v245_v0 }
   0x9   :  { %201 = vmatmul.mubr.msk.f32.vlgmr.msra.gmra.mxu0 %vm32_vm0, %v14_v5  ;;  %228 = vmatpush3.msra.mxu1 %v21_v4 }
   0xa   :  { %212 = vmatprep.mubr.msk.f32.mxu1 %vm246_vm1, %v245_v0  ;;  %203 = vmatprep.mubr.msk.f32.mxu0 %vm246_vm1, %v245_v0 }
   0xb   :  { %213 = vmatmul.mubr.msk.f32.vlgmr.msra.gmra.mxu1 %vm32_vm0, %v18_v6 }
   0xc   :  { %215 = vmatprep.mubr.msk.f32.mxu1 %vm246_vm1, %v245_v0 }
   0xd   :  { %204 = vmatmul.mubr.msk.f32.gmra.mxu0 %vm32_vm0, %v15_v7 }
   0xe   :  { %206 = vmatprep.mubr.msk.f32.mxu0 %vm246_vm1, %v245_v0 }
   0xf   :  { %216 = vmatmul.mubr.msk.f32.gmra.mxu1 %vm32_vm0, %v19_v8 }
  0x10   :  { %218 = vmatprep.mubr.msk.f32.mxu1 %vm246_vm1, %v245_v0 }
  0x11   :  { %207 = vmatmul.mubr.msk.f32.gmra.mxu0 %vm32_vm0, %v16_v9 }
  0x12   :  { %209 = vmatprep.mubr.msk.f32.mxu0 %vm246_vm1, %v245_v0 }
  0x13   :  { %219 = vmatmul.mubr.msk.f32.gmra.mxu1 %vm32_vm0, %v20_v10 }
  0x15   :  { %210 = vmatmul.mubr.msk.f32.gmra.mxu0 %vm32_vm0, %v17_v11 }
  0xc9   :  { %v120_v13 = vpop.f32.mrf.mxu0 }
  0xca   :  { %v121_v14 = vadd.f32 %v173_v12, %v120_v13 }
  0xcb   :  { %v202_v15 = vpop.f32.mrf.mxu0  ;;  %v140_v16 = vpop.f32.mrf.mxu1 }
  0xcc   :  { %231 = vtanh.f32 %v121_v14  ;;  %v141_v17 = vadd.f32 %v173_v12, %v140_v16 }
  0xcd   :  { %v125_v18 = vpop.f32.mrf.mxu0  ;;  %v214_v19 = vpop.f32.mrf.mxu1 }
  0xce   :  { %233 = vtanh.f32 %v141_v17  ;;  %v126_v20 = vadd.f32 %v173_v12, %v125_v18 }
  0xcf   :  { %v205_v21 = vpop.f32.mrf.mxu0  ;;  %v145_v22 = vpop.f32.mrf.mxu1 }
  0xd0   :  { %235 = vtanh.f32 %v126_v20  ;;  %v146_v23 = vadd.f32 %v173_v12, %v145_v22 }
  0xd1   :  { %v130_v24 = vpop.f32.mrf.mxu0  ;;  %v217_v25 = vpop.f32.mrf.mxu1 }
  0xd2   :  { %237 = vtanh.f32 %v146_v23  ;;  %v131_v26 = vadd.f32 %v173_v12, %v130_v24 }
  0xd3   :  { %v208_v27 = vpop.f32.mrf.mxu0  ;;  %v150_v28 = vpop.f32.mrf.mxu1 }
  0xd4   :  { %239 = vtanh.f32 %v131_v26  ;;  %v151_v29 = vadd.f32 %v173_v12, %v150_v28 }
  0xd5   :  { %v135_v30 = vpop.f32.mrf.mxu0  ;;  %v220_v31 = vpop.f32.mrf.mxu1 }
  0xd6   :  { %241 = vtanh.f32 %v151_v29  ;;  %v136_v32 = vadd.f32 %v173_v12, %v135_v30 }
  0xd7   :  { %v211_v33 = vpop.f32.mrf.mxu0 }
  0xd8   :  { %243 = vtanh.f32 %v136_v32 }
  0xd9   :  { %v232_v34 = vpop.eup %231 }
  0xda   :  { %161 = vst.msk [vmem:[%s347_s3] sm:$0xff] %vm32_vm0, %v232_v34 }
  0xdb   :  { %v234_v35 = vpop.eup %233 }
  0xdc   :  { %165 = vst.msk [vmem:[%s347_s3 + $0x20] sm:$0xff] %vm32_vm0, %v234_v35 }
  0xdd   :  { %v236_v36 = vpop.eup %235 }
  0xde   :  { %162 = vst.msk [vmem:[%s347_s3 + $0x8] sm:$0xff] %vm32_vm0, %v236_v36 }
  0xdf   :  { %v238_v37 = vpop.eup %237 }
  0xe0   :  { %166 = vst.msk [vmem:[%s347_s3 + $0x28] sm:$0xff] %vm32_vm0, %v238_v37 }
  0xe1   :  { %v240_v38 = vpop.eup %239 }
  0xe2   :  { %163 = vst.msk [vmem:[%s347_s3 + $0x10] sm:$0xff] %vm32_vm0, %v240_v38 }
  0xe3   :  { %v242_v39 = vpop.eup %241 }
  0xe4   :  { %168 = vst.msk [vmem:[%s347_s3 + $0x30] sm:$0x3f] %vm167_vm2, %v242_v39 }
  0xe5   :  { %v244_v40 = vpop.eup %243 }
  0xe6   :  { %164 = vst.msk [vmem:[%s347_s3 + $0x18] sm:$0xff] %vm32_vm0, %v244_v40 }

// kernel: _forward_core.3
= control target key start
LH: loop header
LB: loop body
LE: loop exit
PB: predicated region body
PF: predicated region fallthrough
CT: control target
= control target key end

     0   :  { %s1276_s30 = smov 0   ;;  %s1383_s0 = inlined_call_operand.vmem [shape: f32[12,9,32], index: 0, kind: input, shape index: {}]   ;;  %s1384_s1 = inlined_call_operand.vmem [shape: f32[12,32,32], index: 1, kind: input, shape index: {}]   ;;  %s1385_s2 = inlined_call_operand.vmem [shape: f32[12,1,32], index: 2, kind: input, shape index: {}]   ;;  %s1386_s3 = inlined_call_operand.vmem [shape: f32[12,32,3], index: 3, kind: input, shape index: {}]   ;;  %s1387_s4 = inlined_call_operand.vmem [shape: f32[12,1,3], index: 4, kind: input, shape index: {}]   ;;  %s1388_s5 = inlined_call_operand.vmem [shape: f32[12,1,1], index: 5, kind: input, shape index: {}]   ;;  %s1389_s6 = inlined_call_operand.vmem [shape: f32[12,9,9], index: 6, kind: input, shape index: {}]   ;;  %s1390_s7 = inlined_call_operand.vmem [shape: f32[12,9,9], index: 7, kind: input, shape index: {}]   ;;  %s1391_s8 = inlined_call_operand.vmem [shape: f32[12,6,3], index: 8, kind: output, shape index: {0}]   ;;  %s1392_s9 = inlined_call_operand.vmem [shape: f32[12,1,1], index: 9, kind: output, shape index: {1}]  }
   0x1 LB: > { %s1082_s10 = sadd.s32 4294967295, %s1221_s30   ;;  %p1086_p0 = scmp.ge.s32.totalorder %s1221_s30, 1  ;;  %s1221_s30 = sphi %s1276_s30, %s20_s30  }
   0x2   : > { %p354_p1 = scmp.lt.s32.totalorder %s1221_s30, 13 }
   0x4   : > { %p355_p2 = pnand %p1086_p0, %p354_p1 }
   0x5   : > { %p421_p3 = scmp.lt.s32.totalorder (!%p355_p2), %s1082_s10, 11 }
   0x6   : > { %358 = sbr.rel (%p355_p2) target bundleno = 1102 (0x44e), region = 52 }
   0xb   : > { %s1394_s10 = smov (!%p421_p3, %s1082_s10), 11  ;;  %vm551_vm0 = vcmask 253952   ;;  %vm464_vm1 = vcmask 261120   ;;  %v1223_v6 = vmov 0   ;;  %vm569_vm3 = vcmask 7168  }
   0xc   : > { %s1287_s11 = sshll.u32 %s1394_s10, 4  ;;  %s444_s17 = scalar_lea.vmem %s1388_s5, %s1394_s10  ;;  %1189 = vset.pattern.permute.xlu1 %v1223_v6  ;;  %1190 = vset.pattern.permute.xlu0 %v1223_v6  ;;  %vm677_vm7 = vcmask 65536   ;;  %vm673_vm8 = vcmask 72704   ;;  %v1224_v39 = vmov 0.0   ;;  %vm1225_vm9 = vmmov 0  }
   0xd   : > { %s425_s14 = scalar_lea.vmem %s1383_s0, %s1287_s11  ;;  %v1106_v7 = vld [vmem:[%s444_s17] ss:$0 sm:$0xff]  ;;  %s449_s20 = scalar_lea.vmem %s1389_s6, %s1287_s11  ;;  %vm724_vm12 = vcmask 0   ;;  %vm927_vm13 = vcmask 21504  }
   0xe   : > { %v463_v0 = vld [vmem:[%s425_s14 + $0x8] sm:$0x1]  ;;  %v1293_v1 = vld [vmem:[%s425_s14] sm:$0xff]  ;;  %664 = vperm.xlu1 %1189, %v1106_v7   ;;  %s1116_s21 = sshll.u32 %s1394_s10, 5  ;;  %s454_s27 = scalar_lea.vmem %s1390_s7, %s1287_s11 }
   0xf   : > { %v547_v2 = vmul.f32 %v463_v0, %v463_v0  ;;  %v546_v3 = vmul.f32 %v1293_v1, %v1293_v1  ;;  %1138 = vmatprep.subr.msk.mxu0 %vm464_vm1, %v463_v0  ;;  %1142 = vmatprep.mubr.msk.f32.mxu0 %vm464_vm1, %v1293_v1  ;;  %v670_v30 = vld [vmem:[%s449_s20 + $0x8] sm:$0x1]  ;;  %v669_v33 = vld [vmem:[%s449_s20] sm:$0xff]  ;;  %s430_s24 = scalar_lea.vmem %s1384_s1, %s1116_s21  ;;  %s433_s11 = scalar_lea.vmem %s1385_s2, %s1394_s10 }
  0x10   : > { %1139 = vmatpush3.xpose.msk.msra.mxu0 %vm464_vm1, %v463_v0  ;;  %v764_v40 = vld [vmem:[%s430_s24 + $0x18] sm:$0xff]  ;;  %v763_v41 = vld [vmem:[%s430_s24 + $0x10] sm:$0xff]  ;;  %v762_v42 = vld [vmem:[%s430_s24 + $0x8] sm:$0xff]  ;;  %s438_s14 = scalar_lea.vmem %s1386_s3, %s1116_s21  ;;  %s441_s17 = scalar_lea.vmem %s1387_s4, %s1394_s10 }
  0x11   : > { %v552_v4 = vsel %vm551_vm0, %v547_v2, 0.0  ;;  %1140 = vmatprep.subr.msk.mxu0 %vm464_vm1, %v1293_v1  ;;  %v548_v5 = vsel %vm464_vm1, %v546_v3, 0.0  ;;  %v761_v43 = vld [vmem:[%s430_s24] sm:$0xff]  ;;  %v698_v55 = vld [vmem:[%s454_s27 + $0x8] sm:$0x1]  ;;  %v846_v6 = vld [vmem:[%s438_s14 + $0x18] sm:$0xff]  ;;  %s461_s26 = scalar_lea.vmem %s1392_s9, %s1394_s10 }
  0x12   : > { %553 = vadd.xlane.f32.xlu0 %v552_v4  ;;  %v697_v54 = vld [vmem:[%s454_s27] sm:$0xff]  ;;  %v710_v57 = vsel %vm677_vm7, %v698_v55, 0.0  ;;  %v845_v7 = vld [vmem:[%s438_s14 + $0x10] sm:$0xff]  ;;  %s1097_s18 = sshll.u32 %s1394_s10, 3 }
  0x13   : > { %v707_v56 = vsel %vm673_vm8, %v697_v54, 0.0  ;;  %s458_s21 = scalar_lea.vmem %s1391_s8, %s1097_s18 }
  0x14   : > { %1141 = vmatpush3.xpose.msk.msra.mxu0 %vm464_vm1, %v1293_v1 }
  0x15   : > { %1152 = vmatprep.subr.mxu0 %v1224_v39 }
  0x16   : > { %549 = vadd.xlane.f32.xlu0 %v548_v5  ;;  %v1109_v5 = vld [vmem:[%s433_s11] ss:$0 sm:$0xff] }
  0x17   : > { %1143 = vmatmul.mubr.msk.f32.vlgmr.msra.gmra.mxu0 %vm464_vm1, %v463_v0 }
  0x18   : > { %1160 = vmatprep.mubr.msk.f32.mxu0 %vm1225_vm9, %v1224_v39  ;;  %1153 = vmatpush3.msra.mxu0 %v764_v40 }
  0x19   : > { %1154 = vmatprep.subr.mxu0 %v1224_v39 }
  0x1a   : > { %1155 = vmatpush3.msra.mxu0 %v763_v41 }
  0x1b   : > { %1156 = vmatprep.subr.mxu0 %v1224_v39 }
  0x1c   : > { %1157 = vmatpush3.msra.mxu0 %v762_v42 }
  0x1d   : > { %1158 = vmatprep.subr.mxu0 %v1224_v39 }
  0x1e   : > { %1159 = vmatpush3.msra.mxu0 %v761_v43 }
  0x1f   : > { %1161 = vmatmul.mubr.msk.f32.vlgmr.msra.gmra.mxu0 %vm464_vm1, %v1293_v1 }
  0x89   : > { %v665_v26 = vpop.permute.xlu1 %664 }
  0x9b   : > { %v554_v8 = vpop.xlane.xlu0 %553 }
  0x9c   : > { %1191 = vrsqrt.f32 %v554_v8  ;;  %vm564_vm2 = vcmp.eq.f32.partialorder %v554_v8, inf  ;;  %v567_v12 = vand.u32 2147483648, %v554_v8  ;;  %vm566_vm4 = vcmp.eq.f32.partialorder %v554_v8, 0.0 }
  0x9f   : > { %v550_v9 = vpop.xlane.xlu0 %549 }
  0xa0   : > { %1193 = vrsqrt.f32 %v550_v9  ;;  %vm557_vm5 = vcmp.eq.f32.partialorder %v550_v9, inf  ;;  %v560_v17 = vand.u32 2147483648, %v550_v9  ;;  %vm559_vm6 = vcmp.eq.f32.partialorder %v550_v9, 0.0 }
  0xa9   : > { %v1192_v10 = vpop.eup %1191 }
  0xaa   : > { %v563_v11 = vmul.f32 %v1192_v10, %v554_v8  ;;  %v844_v10 = vld [vmem:[%s438_s14 + $0x8] sm:$0xff] }
  0xac   : > { %v565_v13 = vsel %vm564_vm2, %v554_v8, %v563_v11  ;;  %v843_v11 = vld [vmem:[%s438_s14] sm:$0xff] }
  0xad   : > { %v1194_v14 = vpop.eup %1193  ;;  %v568_v15 = vsel %vm566_vm4, %v567_v12, %v565_v13 }
  0xae   : > { %1145 = vmatprep.subr.msk.mxu1 %vm569_vm3, %v568_v15  ;;  %v556_v16 = vmul.f32 %v1194_v14, %v550_v9 }
  0xaf   : > { %1146 = vmatpush3.xpose.msk.msra.mxu1 %vm569_vm3, %v568_v15 }
  0xb0   : > { %v558_v18 = vsel %vm557_vm5, %v550_v9, %v556_v16 }
  0xb1   : > { %v561_v19 = vsel %vm559_vm6, %v560_v17, %v558_v18 }
  0xb2   : > { %1147 = vmatprep.subr.msk.mxu1 %vm569_vm3, %v561_v19  ;;  %1149 = vmatprep.mubr.msk.f32.mxu1 %vm569_vm3, %v561_v19 }
  0xb3   : > { %1148 = vmatpush3.xpose.msk.msra.mxu1 %vm569_vm3, %v561_v19 }
  0xb4   : > { %1163 = vmatprep.subr.mxu1 %v1224_v39 }
  0xb6   : > { %1150 = vmatmul.mubr.msk.f32.vlgmr.msra.gmra.mxu1 %vm569_vm3, %v568_v15 }
  0xb7   : > { %1171 = vmatprep.mubr.msk.f32.mxu1 %vm1225_vm9, %v1224_v39  ;;  %1164 = vmatpush3.msra.mxu1 %v846_v6 }
  0xb8   : > { %1165 = vmatprep.subr.mxu1 %v1224_v39 }
  0xb9   : > { %1166 = vmatpush3.msra.mxu1 %v845_v7 }
  0xba   : > { %1167 = vmatprep.subr.mxu1 %v1224_v39 }
  0xbb   : > { %1168 = vmatpush3.msra.mxu1 %v844_v10 }
  0xbc   : > { %1169 = vmatprep.subr.mxu1 %v1224_v39 }
  0xbd   : > { %1170 = vmatpush3.msra.mxu1 %v843_v11 }
  0xd7   : > { %v1144_v24 = vpop.f32.mrf.mxu0 }
  0xd9   : > { %v537_v29 = vpop.f32.mrf.mxu0 }
  0xdf   : > { %v838_v4 = vpop.f32.mrf.mxu0 }
  0xe0   : > { %v839_v8 = vadd.f32 %v1109_v5, %v838_v4 }
  0xe1   : > { %v1162_v9 = vpop.f32.mrf.mxu0 }
 0x176   : > { %v1151_v20 = vpop.f32.mrf.mxu1 }
 0x177   : > { %v652_v21 = vmax.f32 %v1151_v20, 1e-08 }
 0x178   : > { %v642_v22 = vpop.f32.mrf.mxu1 }
 0x179   : > { %1195 = vrcp.f32 %v652_v21  ;;  %v651_v23 = vmax.f32 %v642_v22, 1e-08 }
 0x17b   : > { %1197 = vrcp.f32 %v651_v23 }
 0x186   : > { %v1196_v25 = vpop.eup %1195 }
 0x187   : > { %v656_v27 = vmul.f32 %v1196_v25, %v1144_v24 }
 0x188   : > { %v1198_v28 = vpop.eup %1197 }
 0x189   : > { %v655_v31 = vmul.f32 %v1198_v28, %v537_v29  ;;  %v668_v32 = vmul.f32 %v665_v26, %v656_v27 }
 0x18b   : > { %v667_v34 = vmul.f32 %v665_v26, %v655_v31  ;;  %v672_v35 = vadd.f32 %v670_v30, %v668_v32 }
 0x18d   : > { %v678_v36 = vsel %vm677_vm7, %v672_v35, -inf  ;;  %v671_v37 = vadd.f32 %v669_v33, %v667_v34  ;;  %v1111_v34 = vld [vmem:[%s441_s17] ss:$0 sm:$0xff] }
 0x18e   : > { %679 = vmax.xlane.f32.xlu0 %v678_v36 }
 0x18f   : > { %v674_v38 = vsel %vm673_vm8, %v671_v37, -inf }
 0x190   : > { %675 = vmax.xlane.f32.xlu1 %v674_v38 }
 0x217   : > { %v680_v44 = vpop.xlane.xlu0 %679 }
 0x218   : > { %v682_v45 = vsub.f32 %v672_v35, %v680_v44 }
 0x219   : > { %v676_v46 = vpop.xlane.xlu1 %675 }
 0x21a   : > { %v681_v47 = vsub.f32 %v671_v37, %v676_v46  ;;  %v685_v48 = vmul.f32 1.442695, %v682_v45 }
 0x21c   : > { %v683_v49 = vmul.f32 1.442695, %v681_v47 }
 0x21e   : > { %1199 = vpow2.f32 %v683_v49 }
 0x21f   : > { %1201 = vpow2.f32 %v685_v48 }
 0x22b   : > { %v1200_v50 = vpop.eup %1199 }
 0x22c   : > { %v687_v51 = vsel %vm673_vm8, %v1200_v50, 0.0  ;;  %v1202_v52 = vpop.eup %1201 }
 0x22d   : > { %688 = vadd.xlane.f32.xlu0 %v687_v51  ;;  %v690_v53 = vsel %vm677_vm7, %v1202_v52, 0.0 }
 0x231   : > { %691 = vadd.xlane.f32.xlu0 %v690_v53 }
 0x235   : > { %708 = vadd.xlane.f32.xlu0 %v707_v56 }
 0x239   : > { %711 = vadd.xlane.f32.xlu0 %v710_v57 }
 0x2b6   : > { %v689_v58 = vpop.xlane.xlu0 %688 }
 0x2b7   : > { %1203 = vrcp.f32 %v689_v58 }
 0x2ba   : > { %v692_v59 = vpop.xlane.xlu0 %691 }
 0x2bb   : > { %1205 = vrcp.f32 %v692_v59 }
 0x2bc   : > { %1207 = vtanh.f32 %v839_v8 }
 0x2be   : > { %v709_v13 = vpop.xlane.xlu0 %708 }
 0x2bf   : > { %vm713_vm10 = vcmp.gt.f32.partialorder %v709_v13, 0.0 }
 0x2c0   : > { %v1107_v24 = vsel %vm713_vm10, 1.0, %v1224_v39 }
 0x2c1   : > { %v741_v30 = vsel %vm569_vm3, %v1107_v24, 0.0 }
 0x2c2   : > { %v712_v14 = vpop.xlane.xlu0 %711 }
 0x2c3   : > { %vm714_vm11 = vcmp.gt.f32.partialorder %v712_v14, 0.0 }
 0x2c4   : > { %v1204_v60 = vpop.eup %1203  ;;  %v1108_v25 = vsel %vm714_vm11, 1.0, %v1224_v39 }
 0x2c5   : > { %v695_v61 = vmul.f32 %v1204_v60, %v1200_v50  ;;  %v742_v31 = vsel %vm724_vm12, %v1108_v25, 0.0 }
 0x2c6   : > { %v743_v32 = vadd.f32 %v742_v31, %v741_v30 }
 0x2c7   : > { %v699_v62 = vmul.f32 %v697_v54, %v695_v61 }
 0x2c8   : > { %v1206_v63 = vpop.eup %1205 }
 0x2c9   : > { %v701_v0 = vsel %vm673_vm8, %v699_v62, 0.0  ;;  %v696_v1 = vmul.f32 %v1206_v63, %v1202_v52  ;;  %v1208_v12 = vpop.eup %1207 }
 0x2ca   : > { %702 = vadd.xlane.f32.xlu0 %v701_v0  ;;  %1172 = vmatmul.mubr.msk.f32.vlgmr.msra.gmra.mxu1 %vm464_vm1, %v1208_v12 }
 0x2cb   : > { %v700_v2 = vmul.f32 %v698_v55, %v696_v1 }
 0x2cd   : > { %v704_v3 = vsel %vm677_vm7, %v700_v2, 0.0 }
 0x2ce   : > { %705 = vadd.xlane.f32.xlu0 %v704_v3 }
 0x353   : > { %v703_v15 = vpop.xlane.xlu0 %702 }
 0x354   : > { %v715_v16 = vsel %vm713_vm10, %v703_v15, 1.0 }
 0x355   : > { %1209 = vlog2.f32 %v715_v16 }
 0x357   : > { %v706_v17 = vpop.xlane.xlu0 %705 }
 0x358   : > { %v716_v18 = vsel %vm714_vm11, %v706_v17, 1.0 }
 0x359   : > { %1211 = vlog2.f32 %v716_v18 }
 0x362   : > { %v1210_v19 = vpop.eup %1209 }
 0x363   : > { %v718_v20 = vmul.f32 0.6931472, %v1210_v19 }
 0x365   : > { %v721_v23 = vsel %vm713_vm10, %v718_v20, 0.0 }
 0x366   : > { %v1212_v21 = vpop.eup %1211  ;;  %v723_v27 = vsel %vm569_vm3, %v721_v23, 0.0 }
 0x367   : > { %v720_v22 = vmul.f32 0.6931472, %v1212_v21 }
 0x369   : > { %v722_v26 = vsel %vm714_vm11, %v720_v22, 0.0 }
 0x36a   : > { %v725_v28 = vsel %vm724_vm12, %v722_v26, 0.0 }
 0x36b   : > { %v726_v29 = vadd.f32 %v725_v28, %v723_v27 }
 0x36d   : > { %727 = vadd.xlane.f32.xlu0 %v726_v29 }
 0x371   : > { %744 = vadd.xlane.f32.xlu0 %v743_v32 }
 0x38a   : > { %v923_v33 = vpop.f32.mrf.mxu1 }
 0x38b   : > { %v924_v36 = vadd.f32 %v1111_v34, %v923_v33 }
 0x38c   : > { %v1173_v35 = vpop.f32.mrf.mxu1 }
 0x38d   : > { %928 = vst.msk [vmem:[%s458_s21] sm:$0x3f] %vm927_vm13, %v924_v36 }
 0x3f6   : > { %v728_v37 = vpop.xlane.xlu0 %727 }
 0x3f7   : > { %v729_v38 = vrot.slane %v728_v37, 4 }
 0x3f9   : > { %v730_v39 = vadd.f32 %v729_v38, %v728_v37 }
 0x3fa   : > { %v745_v40 = vpop.xlane.xlu0 %744 }
 0x3fb   : > { %v731_v41 = vrot.slane %v730_v39, 2  ;;  %v746_v42 = vrot.slane %v745_v40, 4 }
 0x3fd   : > { %v747_v43 = vadd.f32 %v746_v42, %v745_v40  ;;  %v732_v44 = vadd.f32 %v731_v41, %v730_v39 }
 0x3ff   : > { %v748_v45 = vrot.slane %v747_v43, 2  ;;  %v733_v46 = vrot.slane %v732_v44, 1 }
 0x401   : > { %v749_v47 = vadd.f32 %v748_v45, %v747_v43  ;;  %v734_v48 = vadd.f32 %v733_v46, %v732_v44 }
 0x403   : > { %1174 = vpush %v734_v48  ;;  %v750_v49 = vrot.slane %v749_v47, 1 }
 0x405   : > { %v751_v50 = vadd.f32 %v750_v49, %v749_v47 }
 0x407   : > { %1176 = vpush %v751_v50 }
 0x434   : > { %s1175_s22 = spop %1174 }
 0x435   : > { %v736_v53 = vstv %s1175_s22 }
 0x436   : > { %v755_v54 = vsub.f32 0.0, %v736_v53 }
 0x438   : > { %s1177_s23 = spop %1176 }
 0x439   : > { %v753_v51 = vstv %s1177_s23 }
 0x43a   : > { %v756_v52 = vmax.f32 %v753_v51, 1.0  ;;  %vm754_vm14 = vcmp.gt.f32.partialorder %v753_v51, 0.0 }
 0x43c   : > { %1213 = vrcp.f32 %v756_v52 }
 0x449   : > { %v1214_v55 = vpop.eup %1213 }
 0x44a   : > { %v758_v56 = vmul.f32 %v1214_v55, %v755_v54 }
 0x44c   : > { %v759_v57 = vsel %vm754_vm14, %v758_v56, 0.0 }
 0x44d   : > { %760 = vst.msk [vmem:[%s461_s26] sm:$0x1] %vm724_vm12, %v759_v57 }
 0x44e PF: > { %s20_s30 = sadd.s32 1, %s1221_s30  }
 0x44f   : > { %p17_p4 = scmp.ge.s32.totalorder %s20_s30, 14  }
 0x451   :  { %19 = sbr.rel (!%p17_p4) target bundleno = 1 (0x1), region = 115 }

</bundles_post_ra>
